<compile_context>
chip_gen: v7x
topology: tpu7x:2x2x1
jax: 0.10.0
libtpu: 0.0.40
codegen_flags: <defaults>
</compile_context>

<pallas_src>
import functools

import jax
import jax.numpy as jnp
from jax.experimental import pallas as pl
from jax.experimental.pallas import tpu as pltpu


# ---------------------------------------------------------------------------
# Model hyperparameters (betaVAE.__init__ with small, kernel-friendly sizes)
# ---------------------------------------------------------------------------
N_DIM = 4           # n_dim (input feature dim)
M_DIM = 2           # m_dim (latent dim)
HIDDEN = 32         # num_layers (hidden width)
RECON_SIGMA = 1.0   # recon_sigma
REG_WEIGHT = 1.0    # reg_weight
LEAKY_SLOPE = 0.01  # nn.LeakyReLU default negative_slope

LANES = 128         # batch lives on the lane axis
BATCH = LANES       # per-call batch (== lane width; larger batches -> grid)

# ---------------------------------------------------------------------------
# Packed parameter slab row offsets (single shared constant table; every
# section starts on an 8-row sublane-tile boundary).
# ---------------------------------------------------------------------------
ROW_W1B = 0                                  # N_DIM blocks of HIDDEN rows
ROW_B1 = ROW_W1B + N_DIM * HIDDEN            # 128
ROW_W2 = ROW_B1 + HIDDEN                     # 160  [out, in] in lanes 0:32
ROW_B2 = ROW_W2 + HIDDEN                     # 192
ROW_WHEAD = ROW_B2 + HIDDEN                  # 224  (4 used of 8) [mu; logvar]
ROW_BHEAD = ROW_WHEAD + 8                    # 232  (4 used of 8)
ROW_WD1B = ROW_BHEAD + 8                     # 240  M_DIM blocks of HIDDEN rows
ROW_BD1 = ROW_WD1B + M_DIM * HIDDEN          # 304
ROW_WD2 = ROW_BD1 + HIDDEN                   # 336
ROW_BD2 = ROW_WD2 + HIDDEN                   # 368
ROW_WD3 = ROW_BD2 + HIDDEN                   # 400  (4 used of 8)
ROW_BD3 = ROW_WD3 + 8                        # 408  (4 used of 8)
PACK_ROWS = ROW_BD3 + 8                      # 416


def _leaky_relu(v):
    return jnp.where(v >= 0, v, LEAKY_SLOPE * v)


# ---------------------------------------------------------------------------
# Kernel
# ---------------------------------------------------------------------------
def betavae_kernel(d_ref, p_ref, out_ref, *, recon_sigma, reg_weight):
    batch = d_ref.shape[1]
    inv_b = 1.0 / batch
    inv_sig2 = 1.0 / (recon_sigma * recon_sigma)

    dslab = d_ref[...]                              # (8, B): [x; eps; pad]
    x = dslab[0:N_DIM, :]                           # (4, B)
    eps = dslab[N_DIM:N_DIM + M_DIM, :]             # (2, B)

    # ---- encoder layer 1 (K=4): VPU broadcast-FMA with pre-broadcast W ----
    h = p_ref[ROW_B1:ROW_B1 + HIDDEN, :]            # lane-replicated bias
    for k in range(N_DIM):
        wk = p_ref[ROW_W1B + k * HIDDEN: ROW_W1B + (k + 1) * HIDDEN, :]
        h = h + wk * x[k:k + 1, :]
    h = _leaky_relu(h)                               # (32, B)

    # ---- encoder layer 2 (K=32): MXU ----
    w2 = p_ref[ROW_W2:ROW_W2 + HIDDEN, 0:HIDDEN]     # (32, 32)
    b2 = p_ref[ROW_B2:ROW_B2 + HIDDEN, :]            # (32, B)
    h = _leaky_relu(jnp.dot(w2, h, preferred_element_type=jnp.float32) + b2)

    # ---- fused latent heads (one MXU dot, rows 0:2 = mu, 2:4 = logvar) ----
    whead = p_ref[ROW_WHEAD:ROW_WHEAD + 2 * M_DIM, 0:HIDDEN]   # (4, 32)
    bhead = p_ref[ROW_BHEAD:ROW_BHEAD + 2 * M_DIM, :]          # (4, B)
    head = jnp.dot(whead, h, preferred_element_type=jnp.float32) + bhead
    mu = head[0:M_DIM, :]                            # (2, B)
    logvar = head[M_DIM:2 * M_DIM, :]                # (2, B)

    # ---- reparameterize (exps on the idle EUP slot) ----
    std = jnp.exp(0.5 * logvar)
    var = jnp.exp(logvar)                            # exact, matches torch
    z = mu + std * eps                               # (2, B)

    # ---- decoder layer 1 (K=2): VPU broadcast-FMA ----
    d = p_ref[ROW_BD1:ROW_BD1 + HIDDEN, :]
    for k in range(M_DIM):
        wk = p_ref[ROW_WD1B + k * HIDDEN: ROW_WD1B + (k + 1) * HIDDEN, :]
        d = d + wk * z[k:k + 1, :]
    d = _leaky_relu(d)                               # (32, B)

    # ---- decoder layer 2 (K=32): MXU ----
    wd2 = p_ref[ROW_WD2:ROW_WD2 + HIDDEN, 0:HIDDEN]
    bd2 = p_ref[ROW_BD2:ROW_BD2 + HIDDEN, :]
    d = _leaky_relu(jnp.dot(wd2, d, preferred_element_type=jnp.float32) + bd2)

    # ---- decoder output layer ----
    wd3 = p_ref[ROW_WD3:ROW_WD3 + N_DIM, 0:HIDDEN]   # (4, 32)
    bd3 = p_ref[ROW_BD3:ROW_BD3 + N_DIM, :]          # (4, B)
    recon_x = jnp.dot(wd3, d, preferred_element_type=jnp.float32) + bd3

    # ---- losses (sub-vreg tiles; reductions are off the hot DMA path) ----
    sq_err = (recon_x - x) ** 2                                  # (4, B)
    reg_terms = mu * mu + var - logvar - 1.0                     # (2, B)
    recon = jnp.sum(sq_err) * (inv_b * inv_sig2)
    reg = jnp.sum(reg_terms) * inv_b

    out_ref[0, 0] = recon
    out_ref[0, 1] = reg
    out_ref[0, 2] = recon + reg_weight * reg


# ---------------------------------------------------------------------------
# Host-side packing (layout plumbing, done once for params / per call for data)
# ---------------------------------------------------------------------------
def pack_params(p):
    """Pack all weights/biases into one lane-dense (416, 128) f32 slab."""
    slab = jnp.zeros((PACK_ROWS, LANES), jnp.float32)

    def bcast_cols(w):      # (HIDDEN, K) -> (K*HIDDEN, LANES), col k lane-replicated
        blocks = [jnp.broadcast_to(w[:, k:k + 1], (HIDDEN, LANES))
                  for k in range(w.shape[1])]
        return jnp.concatenate(blocks, axis=0)

    def bcast_bias(b):      # (F,) -> (F, LANES)
        return jnp.broadcast_to(b[:, None], (b.shape[0], LANES))

    slab = slab.at[ROW_W1B:ROW_W1B + N_DIM * HIDDEN, :].set(bcast_cols(p["w1"]))
    slab = slab.at[ROW_B1:ROW_B1 + HIDDEN, :].set(bcast_bias(p["b1"]))
    slab = slab.at[ROW_W2:ROW_W2 + HIDDEN, 0:HIDDEN].set(p["w2"])
    slab = slab.at[ROW_B2:ROW_B2 + HIDDEN, :].set(bcast_bias(p["b2"]))
    whead = jnp.concatenate([p["wmu"], p["wlv"]], axis=0)        # (4, 32)
    bhead = jnp.concatenate([p["bmu"], p["blv"]], axis=0)        # (4,)
    slab = slab.at[ROW_WHEAD:ROW_WHEAD + 2 * M_DIM, 0:HIDDEN].set(whead)
    slab = slab.at[ROW_BHEAD:ROW_BHEAD + 2 * M_DIM, :].set(bcast_bias(bhead))
    slab = slab.at[ROW_WD1B:ROW_WD1B + M_DIM * HIDDEN, :].set(bcast_cols(p["wd1"]))
    slab = slab.at[ROW_BD1:ROW_BD1 + HIDDEN, :].set(bcast_bias(p["bd1"]))
    slab = slab.at[ROW_WD2:ROW_WD2 + HIDDEN, 0:HIDDEN].set(p["wd2"])
    slab = slab.at[ROW_BD2:ROW_BD2 + HIDDEN, :].set(bcast_bias(p["bd2"]))
    slab = slab.at[ROW_WD3:ROW_WD3 + N_DIM, 0:HIDDEN].set(p["wd3"])
    slab = slab.at[ROW_BD3:ROW_BD3 + N_DIM, :].set(bcast_bias(p["bd3"]))
    return slab


def pack_data(x, eps):
    """Merge x (B,4) and eps (B,2) into one lane-dense (8, B) slab."""
    b = x.shape[0]
    slab = jnp.zeros((8, b), jnp.float32)
    slab = slab.at[0:N_DIM, :].set(x.T)
    slab = slab.at[N_DIM:N_DIM + M_DIM, :].set(eps.T)
    return slab


def betavae_forward(x, eps, packed_params):
    """Full betaVAE forward pass in one Pallas kernel.

    Returns an array of shape (3,): (recon_loss, reg_loss, total_loss).
    """
    assert x.shape[0] == LANES, (
        "this single-block kernel expects batch == 128 (lane width); "
        "larger batches should add a 'parallel' grid over 128-lane chunks")
    data = pack_data(x, eps)
    kernel = functools.partial(
        betavae_kernel, recon_sigma=RECON_SIGMA, reg_weight=REG_WEIGHT)
    vmem_spec = pl.BlockSpec(memory_space=pltpu.MemorySpace.VMEM)
    out = pl.pallas_call(
        kernel,
        out_shape=jax.ShapeDtypeStruct((1, 3), jnp.float32),
        in_specs=[vmem_spec, vmem_spec],
        out_specs=pl.BlockSpec(memory_space=pltpu.MemorySpace.SMEM),
    )(data, packed_params)
    return out[0]


# ---------------------------------------------------------------------------
# Pure-JAX reference (PyTorch [out, in] weight orientation) for validation
# ---------------------------------------------------------------------------
def betavae_reference(x, eps, p):
    h = _leaky_relu(x @ p["w1"].T + p["b1"])
    h = _leaky_relu(h @ p["w2"].T + p["b2"])
    mu = h @ p["wmu"].T + p["bmu"]
    logvar = h @ p["wlv"].T + p["blv"]
    z = mu + jnp.exp(0.5 * logvar) * eps
    d = _leaky_relu(z @ p["wd1"].T + p["bd1"])
    d = _leaky_relu(d @ p["wd2"].T + p["bd2"])
    recon_x = d @ p["wd3"].T + p["bd3"]
    recon = jnp.mean(jnp.sum((recon_x - x) ** 2, axis=1)) / (RECON_SIGMA ** 2)
    reg = jnp.mean(jnp.sum(mu ** 2 + jnp.exp(logvar) - logvar - 1.0, axis=1))
    return jnp.stack([recon, reg, recon + REG_WEIGHT * reg])


def init_params(key):
    """Deterministic small-normal init; weights [out, in], biases [out]."""
    shapes = {
        "w1": (HIDDEN, N_DIM), "b1": (HIDDEN,),
        "w2": (HIDDEN, HIDDEN), "b2": (HIDDEN,),
        "wmu": (M_DIM, HIDDEN), "bmu": (M_DIM,),
        "wlv": (M_DIM, HIDDEN), "blv": (M_DIM,),
        "wd1": (HIDDEN, M_DIM), "bd1": (HIDDEN,),
        "wd2": (HIDDEN, HIDDEN), "bd2": (HIDDEN,),
        "wd3": (N_DIM, HIDDEN), "bd3": (N_DIM,),
    }
    params = {}
    keys = jax.random.split(key, len(shapes))
    for k, (name, shape) in zip(keys, sorted(shapes.items())):
        params[name] = (0.1 * jax.random.normal(k, shape)).astype(jnp.float32)
    return params


if __name__ == "__main__":
    root = jax.random.PRNGKey(0)
    k_params, k_x, k_eps = jax.random.split(root, 3)

    params = init_params(k_params)
    packed = pack_params(params)          # one-time, reusable across calls
    x = jax.random.normal(k_x, (BATCH, N_DIM), dtype=jnp.float32)
    eps = jax.random.normal(k_eps, (BATCH, M_DIM), dtype=jnp.float32)

    losses = jax.block_until_ready(betavae_forward(x, eps, packed))

    ref = betavae_reference(x, eps, params)
    assert jnp.allclose(losses, ref, atol=1e-2, rtol=1e-2), (losses, ref)

    print("KERNEL_OK")
</pallas_src>

<mosaic_0001>
module attributes {stable_mosaic.version = 11 : i64} {
  func.func @betavae_kernel(%arg0: memref<8x128xf32, #tpu.memory_space<vmem>>, %arg1: memref<416x128xf32, #tpu.memory_space<vmem>>, %arg2: memref<1x3xf32, #tpu.memory_space<smem>>) attributes {dimension_semantics = [], scalar_prefetch = 0 : i64, scratch_operands = 0 : i64, tpu.core_type = #tpu.core_type<tc>} {
    %c0 = arith.constant 0 : index
    %c0_0 = arith.constant 0 : index
    %0 = vector.load %arg0[%c0, %c0_0] : memref<8x128xf32, #tpu.memory_space<vmem>>, vector<8x128xf32>
    %1 = vector.extract_strided_slice %0 {offsets = [0, 0], sizes = [4, 128], strides = [1, 1]} : vector<8x128xf32> to vector<4x128xf32>
    %2 = vector.extract_strided_slice %0 {offsets = [4, 0], sizes = [2, 128], strides = [1, 1]} : vector<8x128xf32> to vector<2x128xf32>
    %c128 = arith.constant 128 : index
    %c0_1 = arith.constant 0 : index
    %3 = vector.load %arg1[%c128, %c0_1] : memref<416x128xf32, #tpu.memory_space<vmem>>, vector<32x128xf32>
    %c0_2 = arith.constant 0 : index
    %c0_3 = arith.constant 0 : index
    %4 = vector.load %arg1[%c0_2, %c0_3] : memref<416x128xf32, #tpu.memory_space<vmem>>, vector<32x128xf32>
    %5 = vector.extract_strided_slice %1 {offsets = [0, 0], sizes = [1, 128], strides = [1, 1]} : vector<4x128xf32> to vector<1x128xf32>
    %6 = vector.broadcast %5 : vector<1x128xf32> to vector<32x128xf32>
    %7 = arith.mulf %4, %6 : vector<32x128xf32>
    %8 = arith.addf %3, %7 : vector<32x128xf32>
    %c32 = arith.constant 32 : index
    %c0_4 = arith.constant 0 : index
    %9 = vector.load %arg1[%c32, %c0_4] : memref<416x128xf32, #tpu.memory_space<vmem>>, vector<32x128xf32>
    %10 = vector.extract_strided_slice %1 {offsets = [1, 0], sizes = [1, 128], strides = [1, 1]} : vector<4x128xf32> to vector<1x128xf32>
    %11 = vector.broadcast %10 : vector<1x128xf32> to vector<32x128xf32>
    %12 = arith.mulf %9, %11 : vector<32x128xf32>
    %13 = arith.addf %8, %12 : vector<32x128xf32>
    %c64 = arith.constant 64 : index
    %c0_5 = arith.constant 0 : index
    %14 = vector.load %arg1[%c64, %c0_5] : memref<416x128xf32, #tpu.memory_space<vmem>>, vector<32x128xf32>
    %15 = vector.extract_strided_slice %1 {offsets = [2, 0], sizes = [1, 128], strides = [1, 1]} : vector<4x128xf32> to vector<1x128xf32>
    %16 = vector.broadcast %15 : vector<1x128xf32> to vector<32x128xf32>
    %17 = arith.mulf %14, %16 : vector<32x128xf32>
    %18 = arith.addf %13, %17 : vector<32x128xf32>
    %c96 = arith.constant 96 : index
    %c0_6 = arith.constant 0 : index
    %19 = vector.load %arg1[%c96, %c0_6] : memref<416x128xf32, #tpu.memory_space<vmem>>, vector<32x128xf32>
    %20 = vector.extract_strided_slice %1 {offsets = [3, 0], sizes = [1, 128], strides = [1, 1]} : vector<4x128xf32> to vector<1x128xf32>
    %21 = vector.broadcast %20 : vector<1x128xf32> to vector<32x128xf32>
    %22 = arith.mulf %19, %21 : vector<32x128xf32>
    %23 = arith.addf %18, %22 : vector<32x128xf32>
    %cst = arith.constant 0.000000e+00 : f32
    %24 = vector.broadcast %cst : f32 to vector<32x128xf32>
    %25 = arith.cmpf oge, %23, %24 : vector<32x128xf32>
    %cst_7 = arith.constant 0.00999999977 : f32
    %26 = vector.broadcast %cst_7 : f32 to vector<32x128xf32>
    %27 = arith.mulf %26, %23 : vector<32x128xf32>
    %28 = arith.select %25, %23, %27 : vector<32x128xi1>, vector<32x128xf32>
    %c160 = arith.constant 160 : index
    %c0_8 = arith.constant 0 : index
    %29 = vector.load %arg1[%c160, %c0_8] : memref<416x128xf32, #tpu.memory_space<vmem>>, vector<32x32xf32>
    %c192 = arith.constant 192 : index
    %c0_9 = arith.constant 0 : index
    %30 = vector.load %arg1[%c192, %c0_9] : memref<416x128xf32, #tpu.memory_space<vmem>>, vector<32x128xf32>
    %cst_10 = arith.constant dense<0.000000e+00> : vector<32x128xf32>
    %31 = tpu.matmul %29, %28, %cst_10 {dimension_numbers = #tpu.dot_dimension_numbers<[1], [0], [0], [1], [0, 0, 1, 1], [], []>} : vector<32x32xf32>, vector<32x128xf32>, vector<32x128xf32> -> vector<32x128xf32>
    %32 = arith.addf %31, %30 : vector<32x128xf32>
    %cst_11 = arith.constant 0.000000e+00 : f32
    %33 = vector.broadcast %cst_11 : f32 to vector<32x128xf32>
    %34 = arith.cmpf oge, %32, %33 : vector<32x128xf32>
    %cst_12 = arith.constant 0.00999999977 : f32
    %35 = vector.broadcast %cst_12 : f32 to vector<32x128xf32>
    %36 = arith.mulf %35, %32 : vector<32x128xf32>
    %37 = arith.select %34, %32, %36 : vector<32x128xi1>, vector<32x128xf32>
    %c224 = arith.constant 224 : index
    %c0_13 = arith.constant 0 : index
    %38 = vector.load %arg1[%c224, %c0_13] : memref<416x128xf32, #tpu.memory_space<vmem>>, vector<4x32xf32>
    %c232 = arith.constant 232 : index
    %c0_14 = arith.constant 0 : index
    %39 = vector.load %arg1[%c232, %c0_14] : memref<416x128xf32, #tpu.memory_space<vmem>>, vector<4x128xf32>
    %cst_15 = arith.constant dense<0.000000e+00> : vector<4x128xf32>
    %40 = tpu.matmul %38, %37, %cst_15 {dimension_numbers = #tpu.dot_dimension_numbers<[1], [0], [0], [1], [0, 0, 1, 1], [], []>} : vector<4x32xf32>, vector<32x128xf32>, vector<4x128xf32> -> vector<4x128xf32>
    %41 = arith.addf %40, %39 : vector<4x128xf32>
    %42 = vector.extract_strided_slice %41 {offsets = [0, 0], sizes = [2, 128], strides = [1, 1]} : vector<4x128xf32> to vector<2x128xf32>
    %43 = vector.extract_strided_slice %41 {offsets = [2, 0], sizes = [2, 128], strides = [1, 1]} : vector<4x128xf32> to vector<2x128xf32>
    %cst_16 = arith.constant 5.000000e-01 : f32
    %44 = vector.broadcast %cst_16 : f32 to vector<2x128xf32>
    %45 = arith.mulf %44, %43 : vector<2x128xf32>
    %46 = math.exp %45 : vector<2x128xf32>
    %47 = math.exp %43 : vector<2x128xf32>
    %48 = arith.mulf %46, %2 : vector<2x128xf32>
    %49 = arith.addf %42, %48 : vector<2x128xf32>
    %c304 = arith.constant 304 : index
    %c0_17 = arith.constant 0 : index
    %50 = vector.load %arg1[%c304, %c0_17] : memref<416x128xf32, #tpu.memory_space<vmem>>, vector<32x128xf32>
    %c240 = arith.constant 240 : index
    %c0_18 = arith.constant 0 : index
    %51 = vector.load %arg1[%c240, %c0_18] : memref<416x128xf32, #tpu.memory_space<vmem>>, vector<32x128xf32>
    %52 = vector.extract_strided_slice %49 {offsets = [0, 0], sizes = [1, 128], strides = [1, 1]} : vector<2x128xf32> to vector<1x128xf32>
    %53 = vector.broadcast %52 : vector<1x128xf32> to vector<32x128xf32>
    %54 = arith.mulf %51, %53 : vector<32x128xf32>
    %55 = arith.addf %50, %54 : vector<32x128xf32>
    %c272 = arith.constant 272 : index
    %c0_19 = arith.constant 0 : index
    %56 = vector.load %arg1[%c272, %c0_19] : memref<416x128xf32, #tpu.memory_space<vmem>>, vector<32x128xf32>
    %57 = vector.extract_strided_slice %49 {offsets = [1, 0], sizes = [1, 128], strides = [1, 1]} : vector<2x128xf32> to vector<1x128xf32>
    %58 = vector.broadcast %57 : vector<1x128xf32> to vector<32x128xf32>
    %59 = arith.mulf %56, %58 : vector<32x128xf32>
    %60 = arith.addf %55, %59 : vector<32x128xf32>
    %cst_20 = arith.constant 0.000000e+00 : f32
    %61 = vector.broadcast %cst_20 : f32 to vector<32x128xf32>
    %62 = arith.cmpf oge, %60, %61 : vector<32x128xf32>
    %cst_21 = arith.constant 0.00999999977 : f32
    %63 = vector.broadcast %cst_21 : f32 to vector<32x128xf32>
    %64 = arith.mulf %63, %60 : vector<32x128xf32>
    %65 = arith.select %62, %60, %64 : vector<32x128xi1>, vector<32x128xf32>
    %c336 = arith.constant 336 : index
    %c0_22 = arith.constant 0 : index
    %66 = vector.load %arg1[%c336, %c0_22] : memref<416x128xf32, #tpu.memory_space<vmem>>, vector<32x32xf32>
    %c368 = arith.constant 368 : index
    %c0_23 = arith.constant 0 : index
    %67 = vector.load %arg1[%c368, %c0_23] : memref<416x128xf32, #tpu.memory_space<vmem>>, vector<32x128xf32>
    %cst_24 = arith.constant dense<0.000000e+00> : vector<32x128xf32>
    %68 = tpu.matmul %66, %65, %cst_24 {dimension_numbers = #tpu.dot_dimension_numbers<[1], [0], [0], [1], [0, 0, 1, 1], [], []>} : vector<32x32xf32>, vector<32x128xf32>, vector<32x128xf32> -> vector<32x128xf32>
    %69 = arith.addf %68, %67 : vector<32x128xf32>
    %cst_25 = arith.constant 0.000000e+00 : f32
    %70 = vector.broadcast %cst_25 : f32 to vector<32x128xf32>
    %71 = arith.cmpf oge, %69, %70 : vector<32x128xf32>
    %cst_26 = arith.constant 0.00999999977 : f32
    %72 = vector.broadcast %cst_26 : f32 to vector<32x128xf32>
    %73 = arith.mulf %72, %69 : vector<32x128xf32>
    %74 = arith.select %71, %69, %73 : vector<32x128xi1>, vector<32x128xf32>
    %c400 = arith.constant 400 : index
    %c0_27 = arith.constant 0 : index
    %75 = vector.load %arg1[%c400, %c0_27] : memref<416x128xf32, #tpu.memory_space<vmem>>, vector<4x32xf32>
    %c408 = arith.constant 408 : index
    %c0_28 = arith.constant 0 : index
    %76 = vector.load %arg1[%c408, %c0_28] : memref<416x128xf32, #tpu.memory_space<vmem>>, vector<4x128xf32>
    %cst_29 = arith.constant dense<0.000000e+00> : vector<4x128xf32>
    %77 = tpu.matmul %75, %74, %cst_29 {dimension_numbers = #tpu.dot_dimension_numbers<[1], [0], [0], [1], [0, 0, 1, 1], [], []>} : vector<4x32xf32>, vector<32x128xf32>, vector<4x128xf32> -> vector<4x128xf32>
    %78 = arith.addf %77, %76 : vector<4x128xf32>
    %79 = arith.subf %78, %1 : vector<4x128xf32>
    %80 = arith.mulf %79, %79 : vector<4x128xf32>
    %81 = arith.mulf %42, %42 : vector<2x128xf32>
    %82 = arith.addf %81, %47 : vector<2x128xf32>
    %83 = arith.subf %82, %43 : vector<2x128xf32>
    %cst_30 = arith.constant 1.000000e+00 : f32
    %84 = vector.broadcast %cst_30 : f32 to vector<2x128xf32>
    %85 = arith.subf %83, %84 : vector<2x128xf32>
    %86 = vector.shape_cast %80 : vector<4x128xf32> to vector<1x4x128xf32>
    %cst_31 = arith.constant dense<0.000000e+00> : vector<1xf32>
    %87 = vector.multi_reduction <add>, %86, %cst_31 [1, 2] : vector<1x4x128xf32> to vector<1xf32>
    %88 = vector.shape_cast %87 : vector<1xf32> to vector<1x1x1xf32>
    %89 = vector.extract %88[0, 0, 0] : f32 from vector<1x1x1xf32>
    %cst_32 = arith.constant 7.812500e-03 : f32
    %90 = arith.mulf %89, %cst_32 : f32
    %91 = vector.shape_cast %85 : vector<2x128xf32> to vector<1x2x128xf32>
    %cst_33 = arith.constant dense<0.000000e+00> : vector<1xf32>
    %92 = vector.multi_reduction <add>, %91, %cst_33 [1, 2] : vector<1x2x128xf32> to vector<1xf32>
    %93 = vector.shape_cast %92 : vector<1xf32> to vector<1x1x1xf32>
    %94 = vector.extract %93[0, 0, 0] : f32 from vector<1x1x1xf32>
    %cst_34 = arith.constant 7.812500e-03 : f32
    %95 = arith.mulf %94, %cst_34 : f32
    %c0_35 = arith.constant 0 : index
    %c0_36 = arith.constant 0 : index
    %96 = memref.load %arg2[%c0_35, %c0_36] : memref<1x3xf32, #tpu.memory_space<smem>>
    memref.store %90, %arg2[%c0_35, %c0_36] : memref<1x3xf32, #tpu.memory_space<smem>>
    %c0_37 = arith.constant 0 : index
    %c1 = arith.constant 1 : index
    %97 = memref.load %arg2[%c0_37, %c1] : memref<1x3xf32, #tpu.memory_space<smem>>
    memref.store %95, %arg2[%c0_37, %c1] : memref<1x3xf32, #tpu.memory_space<smem>>
    %cst_38 = arith.constant 1.000000e+00 : f32
    %98 = arith.mulf %cst_38, %95 : f32
    %99 = arith.addf %90, %98 : f32
    %c0_39 = arith.constant 0 : index
    %c2 = arith.constant 2 : index
    %100 = memref.load %arg2[%c0_39, %c2] : memref<1x3xf32, #tpu.memory_space<smem>>
    memref.store %99, %arg2[%c0_39, %c2] : memref<1x3xf32, #tpu.memory_space<smem>>
    return
  }
}

</mosaic_0001>

<bundles_post_ra>
// kernel: tpu_custom_call.1
= control target key start
LH: loop header
LB: loop body
LE: loop exit
PB: predicated region body
PF: predicated region fallthrough
CT: control target
= control target key end

     0   :  { %7 = vsyncpa [#allocation3], 0  ;;  %s926_s0 = inlined_call_operand.hbm [shape: f32[8,128], index: 0, kind: input, shape index: {}]   ;;  %s927_s1 = inlined_call_operand.hbm [shape: f32[416,128], index: 1, kind: input, shape index: {}]   ;;  %s928_s2 = inlined_call_operand.hbm [shape: f32[1,3], index: 2, kind: output, shape index: {}]  }
   0x1   :  { %8 = vsyncpa [#allocation6], 0 }
   0x2   :  { %9 = vsyncpa [#allocation4], 0  ;;  %s814_s9 = smov [#allocation2]   ;;  %s815_s11 = smov [#allocation5]  }
   0x3   :  { %s16_s10 = sshll.u32 %s814_s9, 4  ;;  %s25_s12 = sshll.u32 %s815_s11, 4  ;;  %s17_s10 = int_to_ptr.vmem [resolvable:$true] %s16_s10  ;;  %s837_s12 = int_to_ptr.vmem [resolvable:$true] %s25_s12 }
   0x4   :  { %s754_s15 = scalar_lea.hbm %s926_s0, 128 }
   0x5   :  { %p755_p0 = scmp.ne.s32.totalorder %s926_s0, %s754_s15  ;;  %p758_p1 = scmp.lt.u32.totalorder %s754_s15, %s926_s0 }
   0x7   :  { %p760_p2 = pnand %p758_p1, %p755_p0 }
   0x9   :  { %763 = shalt.err (!%p760_p2)
}
   0xa   :  { %s764_s20 = scalar_lea.vmem %s17_s10, 128  ;;  %p769_p4 = scmp.lt.s32.totalorder %s17_s10, %s17_s10 }
   0xb   :  { %p765_p3 = scmp.ne.s32.totalorder %s17_s10, %s764_s20  ;;  %p770_p5 = scmp.lt.s32.totalorder %s764_s20, %s764_s20 }
   0xd   :  { %p771_p6 = por %p770_p5, %p769_p4 }
   0xf   :  { %p772_p7 = pnand %p771_p6, %p765_p3 }
  0x11   :  { %775 = shalt.err (!%p772_p7)
}
  0x12   :  { %19 = dma.hbm_to_vmem [thread:$0]  %s926_s0, 128, %s17_s10, [#allocation3]  }
  0x13   :  { %s776_s25 = scalar_lea.hbm %s927_s1, 6656 }
  0x14   :  { %p777_p8 = scmp.ne.s32.totalorder %s927_s1, %s776_s25  ;;  %p780_p9 = scmp.lt.u32.totalorder %s776_s25, %s927_s1 }
  0x16   :  { %p782_p10 = pnand %p780_p9, %p777_p8 }
  0x18   :  { %785 = shalt.err (!%p782_p10)
}
  0x19   :  { %s786_s30 = scalar_lea.vmem %s837_s12, 6656  ;;  %p791_p12 = scmp.lt.s32.totalorder %s837_s12, %s837_s12 }
  0x1a   :  { %p787_p11 = scmp.ne.s32.totalorder %s837_s12, %s786_s30  ;;  %p792_p13 = scmp.lt.s32.totalorder %s786_s30, %s786_s30 }
  0x1c   :  { %p793_p0 = por %p792_p13, %p791_p12 }
  0x1e   :  { %p794_p1 = pnand %p793_p0, %p787_p11 }
  0x20   :  { %797 = shalt.err (!%p794_p1)
}
  0x21   :  { %s816_s0 = smov 128   ;;  %s817_s3 = smov 8  }
  0x22   :  { %31 = dma.hbm_to_vmem [thread:$0]  %s927_s1, 6656, %s837_s12, [#allocation6], %s816_s0, %s816_s0, %s817_s3  }
  0x23   :  { %808 = dma.done.wait [#allocation3], 128  }
  0x24   :  { %809 = vsyncadd [#allocation3], 4294967168 }
  0x25   :  { %810 = dma.done.wait [#allocation6], 6656  }
  0x26   :  { %811 = vsyncadd [#allocation6], 4294960640  ;;  %v47_v0 = vlaneseq  ;;  %v874_v6 = vld [vmem:[#allocation2] sm:$0xff]  ;;  %v39_v7 = vld [vmem:[#allocation5 + $0x80] sm:$0xff]  ;;  %vm127_vm0 = vcmask 261120   ;;  %vm819_vm5 = vmmov 0  }
  0x27   :  { %v40_v8 = vld [vmem:[#allocation5 + $0x88] sm:$0xff]  ;;  %v43_v9 = vld [vmem:[#allocation5] sm:$0xff]  ;;  %v41_v25 = vld [vmem:[#allocation5 + $0x90] sm:$0xff]  ;;  %s798_s12 = scalar_lea.hbm %s928_s2, 16 }
  0x28   :  { %v868_v1 = vshrl.u32 %v47_v0, 7  ;;  %v44_v10 = vld [vmem:[#allocation5 + $0x8] sm:$0xff]  ;;  %v59_v12 = vld [vmem:[#allocation5 + $0x20] sm:$0xff]  ;;  %v42_v29 = vld [vmem:[#allocation5 + $0x98] sm:$0xff]  ;;  %p799_p2 = scmp.ne.s32.totalorder %s928_s2, %s798_s12  ;;  %p802_p3 = scmp.lt.u32.totalorder %s798_s12, %s928_s2 }
  0x29   :  { %v60_v16 = vld [vmem:[#allocation5 + $0x28] sm:$0xff]  ;;  %v75_v17 = vld [vmem:[#allocation5 + $0x40] sm:$0xff]  ;;  %v45_v30 = vld [vmem:[#allocation5 + $0x10] sm:$0xff] }
  0x2a   :  { %v49_v2 = vsub.s32 0, %v868_v1  ;;  %v65_v3 = vsub.s32 1, %v868_v1  ;;  %v81_v4 = vsub.s32 2, %v868_v1  ;;  %v97_v5 = vsub.s32 3, %v868_v1  ;;  %v76_v18 = vld [vmem:[#allocation5 + $0x48] sm:$0xff]  ;;  %v91_v23 = vld [vmem:[#allocation5 + $0x60] sm:$0xff]  ;;  %p804_p4 = pnand %p802_p3, %p799_p2 }
  0x2b   :  { %v92_v24 = vld [vmem:[#allocation5 + $0x68] sm:$0xff]  ;;  %v46_v31 = vld [vmem:[#allocation5 + $0x18] sm:$0xff]  ;;  %v61_v36 = vld [vmem:[#allocation5 + $0x30] sm:$0xff] }
  0x2c   :  { %v50_v11 = vrot.slane %v874_v6, %v49_v2  ;;  %v66_v13 = vrot.slane %v874_v6, %v65_v3  ;;  %v82_v14 = vrot.slane %v874_v6, %v81_v4  ;;  %v98_v15 = vrot.slane %v874_v6, %v97_v5  ;;  %v62_v37 = vld [vmem:[#allocation5 + $0x38] sm:$0xff]  ;;  %v77_v38 = vld [vmem:[#allocation5 + $0x50] sm:$0xff]  ;;  %v119_v50 = vld [vmem:[#allocation5 + $0xa0] sm:$0xff] }
  0x2d   :  { %v78_v42 = vld [vmem:[#allocation5 + $0x58] sm:$0xff]  ;;  %v93_v48 = vld [vmem:[#allocation5 + $0x70] sm:$0xff]  ;;  %668 = vmatprep.mubr.msk.f32.mxu0 %vm127_vm0, %v119_v50 }
  0x2e   :  { %v51_v19 = vmul.f32 %v50_v11, %v43_v9  ;;  %v52_v20 = vmul.f32 %v50_v11, %v44_v10  ;;  %v67_v21 = vmul.f32 %v66_v13, %v59_v12  ;;  %v68_v22 = vmul.f32 %v66_v13, %v60_v16  ;;  %v94_v49 = vld [vmem:[#allocation5 + $0x78] sm:$0xff] }
  0x2f   :  { %v83_v26 = vmul.f32 %v82_v14, %v75_v17  ;;  %v84_v27 = vmul.f32 %v82_v14, %v76_v18  ;;  %v99_v28 = vmul.f32 %v98_v15, %v91_v23  ;;  %v53_v34 = vmul.f32 %v50_v11, %v45_v30  ;;  %v122_v16 = vld [vmem:[#allocation5 + $0xb8] sm:$0xff] }
  0x30   :  { %v55_v32 = vadd.f32 %v51_v19, %v39_v7  ;;  %v56_v33 = vadd.f32 %v52_v20, %v40_v8  ;;  %v54_v35 = vmul.f32 %v50_v11, %v46_v31  ;;  %v100_v39 = vmul.f32 %v98_v15, %v92_v24  ;;  %v124_v19 = vld [vmem:[#allocation5 + $0xc8] sm:$0xff]  ;;  %v123_v20 = vld [vmem:[#allocation5 + $0xc0] sm:$0xff] }
  0x31   :  { %v69_v40 = vmul.f32 %v66_v13, %v61_v36  ;;  %v70_v41 = vmul.f32 %v66_v13, %v62_v37  ;;  %v85_v43 = vmul.f32 %v82_v14, %v77_v38  ;;  %v57_v46 = vadd.f32 %v53_v34, %v41_v25  ;;  %v126_v25 = vld [vmem:[#allocation5 + $0xd8] sm:$0xff] }
  0x32   :  { %v71_v44 = vadd.f32 %v67_v21, %v55_v32  ;;  %v72_v45 = vadd.f32 %v68_v22, %v56_v33  ;;  %v58_v47 = vadd.f32 %v54_v35, %v42_v29  ;;  %v86_v51 = vmul.f32 %v82_v14, %v78_v42  ;;  %v120_v14 = vld [vmem:[#allocation5 + $0xa8] sm:$0xff]  ;;  %v373_v42 = vld [vmem:[#allocation5 + $0x150] sm:$0xff] }
  0x33   :  { %v73_v54 = vadd.f32 %v69_v40, %v57_v46  ;;  %v101_v56 = vmul.f32 %v98_v15, %v93_v48  ;;  %v102_v57 = vmul.f32 %v98_v15, %v94_v49  ;;  %v121_v15 = vld [vmem:[#allocation5 + $0xb0] sm:$0xff]  ;;  %v818_v17 = vmov 0.0|0.0  }
  0x34   :  { %v87_v52 = vadd.f32 %v83_v26, %v71_v44  ;;  %v88_v53 = vadd.f32 %v84_v27, %v72_v45  ;;  %v74_v55 = vadd.f32 %v70_v41, %v58_v47  ;;  %718 = vmatprep.subr.bf16.mxu1 %v818_v17  ;;  %v820_v18 = vmov 0.0   ;;  %v125_v27 = vld [vmem:[#allocation5 + $0xd0] sm:$0xff]  ;;  %v237_v41 = vld [vmem:[#allocation5 + $0xe0] sm:$0xf] }
  0x35   :  { %v89_v60 = vadd.f32 %v85_v43, %v73_v54  ;;  %682 = vmatprep.mubr.msk.f32.mxu1 %vm819_vm5, %v820_v18  ;;  %v238_v43 = vld [vmem:[#allocation5 + $0xe8] sm:$0xf]  ;;  %v318_v49 = vrot.slane %v874_v6, 2  ;;  %v325_v54 = vld [vmem:[#allocation5 + $0x130] sm:$0xff] }
  0x36   :  { %v103_v58 = vadd.f32 %v99_v28, %v87_v52  ;;  %v104_v59 = vadd.f32 %v100_v39, %v88_v53  ;;  %v90_v61 = vadd.f32 %v86_v51, %v74_v55  ;;  %v329_v55 = vld [vmem:[#allocation5 + $0xf0] sm:$0xff] }
  0x37   :  { %v105_v0 = vadd.f32 %v101_v56, %v89_v60  ;;  %v330_v56 = vld [vmem:[#allocation5 + $0xf8] sm:$0xff]  ;;  %v331_v60 = vld [vmem:[#allocation5 + $0x100] sm:$0xff] }
  0x38   :  { %vm107_vm1 = vcmp.ge.f32.partialorder %v103_v58, 0.0  ;;  %vm108_vm2 = vcmp.ge.f32.partialorder %v104_v59, 0.0  ;;  %v111_v62 = vmul.f32 0.01, %v103_v58  ;;  %v112_v63 = vmul.f32 0.01, %v104_v59 }
  0x39   :  { %v106_v4 = vadd.f32 %v102_v57, %v90_v61  ;;  %vm109_vm3 = vcmp.ge.f32.partialorder %v105_v0, 0.0  ;;  %v113_v9 = vmul.f32 0.01, %v105_v0  ;;  %v332_v61 = vld [vmem:[#allocation5 + $0x108] sm:$0xff] }
  0x3a   :  { %v115_v5 = vsel %vm107_vm1, %v103_v58, %v111_v62  ;;  %v116_v7 = vsel %vm108_vm2, %v104_v59, %v112_v63  ;;  %v326_v59 = vld [vmem:[#allocation5 + $0x138] sm:$0xff]  ;;  %v345_v62 = vld [vmem:[#allocation5 + $0x110] sm:$0xff] }
  0x3b   :  { %v710_v8 = vpack.c.bf16 %v116_v7, %v115_v5  ;;  %vm110_vm4 = vcmp.ge.f32.partialorder %v106_v4, 0.0  ;;  %v114_v10 = vmul.f32 0.01, %v106_v4  ;;  %v117_v11 = vsel %vm109_vm3, %v105_v0, %v113_v9  ;;  %v346_v63 = vld [vmem:[#allocation5 + $0x118] sm:$0xff]  ;;  %v347_v0 = vld [vmem:[#allocation5 + $0x120] sm:$0xff]  ;;  %v348_v9 = vld [vmem:[#allocation5 + $0x128] sm:$0xff] }
  0x3c   :  { %v327_v7 = vld [vmem:[#allocation5 + $0x140] sm:$0xff]  ;;  %vm577_vm3 = vcmask 1043456  }
  0x3d   :  { %711 = vmatprep.subr.bf16.mxu0 %v710_v8  ;;  %v118_v12 = vsel %vm110_vm4, %v106_v4, %v114_v10 }
  0x3e   :  { %713 = vmatpush3.bf16.msra.mxu0 %v710_v8  ;;  %v714_v13 = vpack.c.bf16 %v118_v12, %v117_v11  ;;  %v328_v8 = vld [vmem:[#allocation5 + $0x148] sm:$0xff] }
  0x40   :  { %715 = vmatprep.subr.bf16.mxu0 %v714_v13 }
  0x42   :  { %717 = vmatpush3.bf16.msra.mxu0 %v714_v13 }
  0x45   :  { %669 = vmatmul.mubr.msk.f32.vlgmr.msra.gmra.mrb[0].mxu0 %vm127_vm0, %v120_v14 }
  0x46   :  { %671 = vmatprep.mubr.msk.f32.mxu0 %vm127_vm0, %v121_v15 }
  0x49   :  { %672 = vmatmul.mubr.msk.f32.gmra.mrb[2].mxu0 %vm127_vm0, %v122_v16 }
  0x4a   :  { %693 = vmatprep.mubr.msk.f32.mxu0 %vm127_vm0, %v373_v42 }
 0x118   :  { %v670_v21 = vpop.f32.mrb[0].mxu0 }
 0x119   :  { %v212_v22 = vadd.f32 %v670_v21, %v124_v19  ;;  %v206_v23 = vpop.f32.mrb[1].mxu0 }
 0x11a   :  { %v207_v24 = vadd.f32 %v206_v23, %v123_v20 }
 0x11b   :  { %v230_v26 = vmul.f32 0.01, %v212_v22  ;;  %vm226_vm6 = vcmp.ge.f32.partialorder %v212_v22, 0.0 }
 0x11c   :  { %v229_v28 = vmul.f32 0.01, %v207_v24  ;;  %v673_v29 = vpop.f32.mrb[2].mxu0  ;;  %vm225_vm7 = vcmp.ge.f32.partialorder %v207_v24, 0.0 }
 0x11d   :  { %v222_v30 = vadd.f32 %v673_v29, %v126_v25  ;;  %v216_v31 = vpop.f32.mrb[3].mxu0  ;;  %v234_v32 = vsel %vm226_vm6, %v212_v22, %v230_v26 }
 0x11e   :  { %v217_v33 = vadd.f32 %v216_v31, %v125_v27  ;;  %v233_v34 = vsel %vm225_vm7, %v207_v24, %v229_v28 }
 0x11f   :  { %vm228_vm8 = vcmp.ge.f32.partialorder %v222_v30, 0.0  ;;  %v232_v35 = vmul.f32 0.01, %v222_v30  ;;  %v719_v36 = vpack.c.bf16 %v234_v32, %v233_v34  ;;  %v374_v32 = vld [vmem:[#allocation5 + $0x158] sm:$0xff]  ;;  %v376_v34 = vld [vmem:[#allocation5 + $0x168] sm:$0xff] }
 0x120   :  { %vm227_vm9 = vcmp.ge.f32.partialorder %v217_v33, 0.0  ;;  %v231_v37 = vmul.f32 0.01, %v217_v33 }
 0x121   :  { %720 = vmatpush3.bf16.msra.mxu1 %v719_v36  ;;  %v236_v38 = vsel %vm228_vm8, %v222_v30, %v232_v35  ;;  %v378_v35 = vld [vmem:[#allocation5 + $0x178] sm:$0xff]  ;;  %v377_v36 = vld [vmem:[#allocation5 + $0x170] sm:$0xff] }
 0x122   :  { %721 = vmatprep.subr.bf16.mxu1 %v818_v17  ;;  %v235_v39 = vsel %vm227_vm9, %v217_v33, %v231_v37  ;;  %v375_v33 = vld [vmem:[#allocation5 + $0x160] sm:$0xff] }
 0x123   :  { %v722_v40 = vpack.c.bf16 %v236_v38, %v235_v39 }
 0x125   :  { %723 = vmatpush3.bf16.msra.mxu1 %v722_v40 }
 0x126   :  { %732 = vmatprep.subr.bf16.mxu1 %v818_v17 }
 0x128   :  { %683 = vmatmul.mubr.msk.f32.vlgmr.msra.gmra.mrb[0].mxu1 %vm127_vm0, %v237_v41  ;;  %v380_v41 = vld [vmem:[#allocation5 + $0x188] sm:$0xff] }
 0x129   :  { %707 = vmatprep.mubr.msk.f32.mxu1 %vm819_vm5, %v820_v18 }
 0x1fb   :  { %v308_v44 = vpop.f32.mrb[0].mxu1 }
 0x1fc   :  { %v895_v45 = vadd.f32 %v308_v44, %v238_v43  ;;  %v684_v46 = vpop.f32.mrb[1].mxu1  ;;  %v379_v43 = vld [vmem:[#allocation5 + $0x180] sm:$0xff] }
 0x1fe   :  { %v312_v47 = vmul.f32 0.5, %v895_v45 }
 0x200   :  { %v313_v48 = vmul.f32 1.442695, %v312_v47 }
 0x202   :  { %750 = vpow2.f32 %v313_v48 }
 0x20c   :  { %v751_v50 = vpop.eup %750 }
 0x20d   :  { %v320_v51 = vmul.f32 %v751_v50, %v318_v49 }
 0x20f   :  { %v322_v52 = vrot.slane %v320_v51, 2 }
 0x211   :  { %v324_v53 = vadd.f32 %v322_v52, %v895_v45 }
 0x213   :  { %v336_v57 = vrot.slane %v324_v53, %v49_v2  ;;  %v352_v58 = vrot.slane %v324_v53, %v65_v3 }
 0x215   :  { %v337_v4 = vmul.f32 %v336_v57, %v329_v55  ;;  %v338_v5 = vmul.f32 %v336_v57, %v330_v56  ;;  %v339_v10 = vmul.f32 %v336_v57, %v331_v60  ;;  %v340_v11 = vmul.f32 %v336_v57, %v332_v61 }
 0x216   :  { %v353_v14 = vmul.f32 %v352_v58, %v345_v62  ;;  %v354_v2 = vmul.f32 %v352_v58, %v346_v63  ;;  %v355_v3 = vmul.f32 %v352_v58, %v347_v0  ;;  %v356_v16 = vmul.f32 %v352_v58, %v348_v9  ;;  %v490_v58 = vld [vmem:[#allocation5 + $0x190] sm:$0xf]  ;;  %v491_v63 = vld [vmem:[#allocation5 + $0x198] sm:$0xf] }
 0x217   :  { %v341_v12 = vadd.f32 %v337_v4, %v325_v54  ;;  %v342_v13 = vadd.f32 %v338_v5, %v326_v59  ;;  %v343_v15 = vadd.f32 %v339_v10, %v327_v7  ;;  %v344_v1 = vadd.f32 %v340_v11, %v328_v8 }
 0x218   :  { %v315_v59 = vmul.f32 1.442695, %v895_v45  ;;  %v567_v62 = vmul.f32 %v895_v45, %v895_v45 }
 0x219   :  { %v357_v18 = vadd.f32 %v353_v14, %v341_v12  ;;  %v358_v19 = vadd.f32 %v354_v2, %v342_v13  ;;  %v359_v20 = vadd.f32 %v355_v3, %v343_v15  ;;  %v360_v21 = vadd.f32 %v356_v16, %v344_v1 }
 0x21a   :  { %752 = vpow2.f32 %v315_v59 }
 0x21b   :  { %vm361_vm10 = vcmp.ge.f32.partialorder %v357_v18, 0.0  ;;  %vm362_vm11 = vcmp.ge.f32.partialorder %v358_v19, 0.0  ;;  %v365_v22 = vmul.f32 0.01, %v357_v18  ;;  %v366_v23 = vmul.f32 0.01, %v358_v19 }
 0x21c   :  { %vm363_vm12 = vcmp.ge.f32.partialorder %v359_v20, 0.0  ;;  %vm364_vm13 = vcmp.ge.f32.partialorder %v360_v21, 0.0  ;;  %v367_v24 = vmul.f32 0.01, %v359_v20  ;;  %v368_v25 = vmul.f32 0.01, %v360_v21 }
 0x21d   :  { %v369_v26 = vsel %vm361_vm10, %v357_v18, %v365_v22  ;;  %v370_v27 = vsel %vm362_vm11, %v358_v19, %v366_v23 }
 0x21e   :  { %v724_v28 = vpack.c.bf16 %v370_v27, %v369_v26  ;;  %v371_v29 = vsel %vm363_vm12, %v359_v20, %v367_v24  ;;  %v372_v30 = vsel %vm364_vm13, %v360_v21, %v368_v25 }
 0x21f   :  { %v728_v31 = vpack.c.bf16 %v372_v30, %v371_v29 }
 0x220   :  { %725 = vmatprep.subr.bf16.mxu0 %v724_v28 }
 0x221   :  { %727 = vmatpush3.bf16.msra.mxu0 %v724_v28 }
 0x222   :  { %729 = vmatprep.subr.bf16.mxu0 %v728_v31 }
 0x224   :  { %v753_v60 = vpop.eup %752 }
 0x225   :  { %731 = vmatpush3.bf16.msra.mxu0 %v728_v31  ;;  %v569_v61 = vrot.slane %v753_v60, 2 }
 0x227   :  { %v571_v0 = vadd.f32 %v569_v61, %v567_v62 }
 0x228   :  { %694 = vmatmul.mubr.msk.f32.vlgmr.msra.gmra.mrb[4].mxu0 %vm127_vm0, %v374_v32 }
 0x229   :  { %696 = vmatprep.mubr.msk.f32.mxu0 %vm127_vm0, %v375_v33 }
 0x22c   :  { %697 = vmatmul.mubr.msk.f32.gmra.mrb[6].mxu0 %vm127_vm0, %v376_v34 }
 0x2fb   :  { %v695_v37 = vpop.f32.mrb[4].mxu0 }
 0x2fc   :  { %v465_v38 = vadd.f32 %v695_v37, %v378_v35  ;;  %v459_v39 = vpop.f32.mrb[5].mxu0 }
 0x2fd   :  { %v460_v40 = vadd.f32 %v459_v39, %v377_v36 }
 0x2fe   :  { %vm479_vm14 = vcmp.ge.f32.partialorder %v465_v38, 0.0  ;;  %v483_v42 = vmul.f32 0.01, %v465_v38 }
 0x2ff   :  { %vm478_vm15 = vcmp.ge.f32.partialorder %v460_v40, 0.0  ;;  %v482_v44 = vmul.f32 0.01, %v460_v40  ;;  %v698_v46 = vpop.f32.mrb[6].mxu0 }
 0x300   :  { %v487_v47 = vsel %vm479_vm14, %v465_v38, %v483_v42  ;;  %v475_v48 = vadd.f32 %v698_v46, %v380_v41  ;;  %v469_v49 = vpop.f32.mrb[7].mxu0 }
 0x301   :  { %v486_v50 = vsel %vm478_vm15, %v460_v40, %v482_v44  ;;  %v470_v51 = vadd.f32 %v469_v49, %v379_v43 }
 0x302   :  { %v733_v52 = vpack.c.bf16 %v487_v47, %v486_v50  ;;  %vm481_vm1 = vcmp.ge.f32.partialorder %v475_v48, 0.0  ;;  %v485_v53 = vmul.f32 0.01, %v475_v48 }
 0x303   :  { %vm480_vm2 = vcmp.ge.f32.partialorder %v470_v51, 0.0  ;;  %v484_v54 = vmul.f32 0.01, %v470_v51 }
 0x304   :  { %v489_v55 = vsel %vm481_vm1, %v475_v48, %v485_v53  ;;  %734 = vmatpush3.bf16.msra.mxu1 %v733_v52 }
 0x305   :  { %v488_v56 = vsel %vm480_vm2, %v470_v51, %v484_v54  ;;  %735 = vmatprep.subr.bf16.mxu1 %v818_v17  ;;  %v573_v17 = vrot.slane %v895_v45, 2 }
 0x306   :  { %v736_v57 = vpack.c.bf16 %v489_v55, %v488_v56 }
 0x307   :  { %v575_v9 = vsub.f32 %v571_v0, %v573_v17 }
 0x308   :  { %737 = vmatpush3.bf16.msra.mxu1 %v736_v57 }
 0x309   :  { %v633_v12 = vadd.f32 -1.0, %v575_v9 }
 0x30b   :  { %708 = vmatmul.mubr.msk.f32.vlgmr.msra.gmra.mrb[2].mxu1 %vm127_vm0, %v490_v58  ;;  %vm589_vm0 = vcmask 1041408  }
 0x30c   :  { %v590_v13 = vsel %vm589_vm0, %v633_v12, 0.0 }
 0x3de   :  { %v561_v4 = vpop.f32.mrb[2].mxu1 }
 0x3df   :  { %v562_v5 = vadd.f32 %v561_v4, %v491_v63  ;;  %v709_v7 = vpop.f32.mrb[3].mxu1 }
 0x3e1   :  { %v565_v8 = vsub.f32 %v562_v5, %v874_v6 }
 0x3e3   :  { %v566_v10 = vmul.f32 %v565_v8, %v565_v8 }
 0x3e5   :  { %v578_v11 = vsel %vm577_vm3, %v566_v10, 0.0 }
 0x3e6   :  { %579 = vadd.xlane.f32.xlu0 %v578_v11 }
 0x3ea   :  { %591 = vadd.xlane.f32.xlu0 %v590_v13 }
 0x473   :  { %v580_v14 = vpop.xlane.xlu0 %579 }
 0x474   :  { %v581_v2 = vrot.slane %v580_v14, 4 }
 0x476   :  { %v582_v15 = vadd.f32 %v581_v2, %v580_v14 }
 0x477   :  { %v592_v1 = vpop.xlane.xlu0 %591 }
 0x478   :  { %v583_v3 = vrot.slane %v582_v15, 2  ;;  %v593_v16 = vrot.slane %v592_v1, 4 }
 0x47a   :  { %v594_v18 = vadd.f32 %v593_v16, %v592_v1  ;;  %v584_v19 = vadd.f32 %v583_v3, %v582_v15 }
 0x47c   :  { %v595_v45 = vrot.slane %v594_v18, 2  ;;  %v585_v20 = vrot.slane %v584_v19, 1 }
 0x47e   :  { %v596_v6 = vadd.f32 %v595_v45, %v594_v18  ;;  %v586_v21 = vadd.f32 %v585_v20, %v584_v19 }
 0x480   :  { %738 = vpush %v586_v21  ;;  %v597_v22 = vrot.slane %v596_v6, 1 }
 0x482   :  { %v598_v23 = vadd.f32 %v597_v22, %v596_v6 }
 0x484   :  { %740 = vpush %v598_v23 }
 0x4b1   :  { %s739_s1 = spop %738 }
 0x4b2   :  { %s588_s6 = smul.f32 0.0078125, %s739_s1 }
 0x4b4   :  { %602 = sst [smem:[#allocation7]] %s588_s6 }
 0x4b5   :  { %s741_s7 = spop %740 }
 0x4b6   :  { %s600_s8 = smul.f32 0.0078125, %s741_s7 }
 0x4b8   :  { %604 = sst [smem:[#allocation7 + $0x1]] %s600_s8 }
 0x4b9   :  { %s605_s9 = sadd.f32 %s600_s8, %s588_s6 }
 0x4bb   :  { %607 = sst [smem:[#allocation7 + $0x2]] %s605_s9 }
 0x4bc   :  { %807 = shalt.err (!%p804_p4)
}
 0x4bd   :  { %s821_s17 = smov [#allocation7]  }
 0x4be   :  { %615 = dma.smem_to_hbm %s821_s17, 16, %s928_s2, [#allocation4]  }
 0x4bf   :  { %812 = dma.done.wait [#allocation4], 16  }
 0x4c0   :  { %813 = vsyncadd [#allocation4], 4294967280 }
 0x4c1   :  { %619 = sfence }
 0x4c2   :  { %620 = vsyncpa [#allocation3], 1 }
 0x4c3   :  { %621 = vsyncpa [#allocation6], 1 }
 0x4c4   :  { %622 = vsyncpa [#allocation4], 1 }

</bundles_post_ra>
